<compile_context>
chip_gen: v7x
topology: tpu7x:2x2x1
jax: 0.10.0
libtpu: 0.0.40
codegen_flags: <defaults>
</compile_context>

<pallas_src>
import functools

import jax
import jax.numpy as jnp
from jax import lax
from jax.experimental import pallas as pl
from jax.experimental.pallas import tpu as pltpu


# ----------------------------- Pallas kernel -----------------------------

def _gram_kernel(f_ref, o_ref, *, inv_p, total_p, tc, split_c, mask_p):
    # f_ref: (1, C, tp)  feature tile in the input dtype (e.g. f32)
    # o_ref: (1, tc, C)  f32 Gram block, resident across the P grid axis
    p = pl.program_id(2)

    @pl.when(p == 0)
    def _init():
        o_ref[...] = jnp.zeros_like(o_ref)

    f = f_ref[0].astype(jnp.bfloat16)                  # (C, tp); VPU cast hides under MXU
    c_full, tp = f.shape

    if mask_p:
        # Last P tile extends past P: columns >= rem are undefined -> zero them.
        rem = total_p - p * tp                         # valid columns in this tile
        col = lax.broadcasted_iota(jnp.int32, (c_full, tp), 1)
        f = jnp.where(col < rem, f, 0.0)

    if split_c:
        # Row slab of the same tile (lets two TensorCores share one batch item).
        ci = pl.program_id(1)
        row0 = pl.multiple_of(ci * tc, 8)              # tc is a multiple of 8
        lhs = f_ref[0, pl.ds(row0, tc), :].astype(jnp.bfloat16)   # (tc, tp)
        if mask_p:
            col_l = lax.broadcasted_iota(jnp.int32, (tc, tp), 1)
            lhs = jnp.where(col_l < rem, lhs, 0.0)
    else:
        lhs = f                                        # tc == C

    # (tc, tp) . (C, tp)^T -> (tc, C): contraction over lanes, f32 accumulation
    # straight into the resident output block (no scratch).
    o_ref[0] += lax.dot_general(lhs, f, (((1,), (1,)), ((), ())),
                                preferred_element_type=jnp.float32)

    @pl.when(p == pl.num_programs(2) - 1)
    def _finalize():
        o_ref[...] = o_ref[...] * inv_p


# ----------------------------- Wrapper -----------------------------

def _round_up(x, m):
    return (x + m - 1) // m * m


def _feature_spec(block_shape, index_map, n_buffers):
    """Input BlockSpec, optionally with >2-deep pipelining (guarded fallback)."""
    if n_buffers > 2:
        try:
            return pl.BlockSpec(block_shape, index_map,
                                pipeline_mode=pl.Buffered(n_buffers))
        except Exception:
            pass  # pipeline_mode unavailable -> default double-buffering
    return pl.BlockSpec(block_shape, index_map)


def gram_matrix(x_nchw, *, tp=None):
    """Pallas TPU Gram matrix: (N, C, H, W) -> (N, C, C), gram = f f^T / (H*W)."""
    N, C, H, W = x_nchw.shape
    P = H * W

    # Free reshape (merging the contiguous minor dims); no cast, no pad.
    f = x_nchw.reshape(N, C, P)
    in_itemsize = jnp.dtype(x_nchw.dtype).itemsize

    # ---- P tiling: budget the (C, tp) tile against VMEM and balance the tiles. ----
    P128 = _round_up(P, 128)
    if tp is None:
        tile_budget = 6 << 20                                        # bytes per input buffer
        tp_max = max(128, (tile_budget // max(C * in_itemsize, 1)) // 128 * 128)
        tp_ub = min(tp_max, 8192, P128)                              # multiples of 128
        n_p = pl.cdiv(P128, tp_ub)
        tp = _round_up(pl.cdiv(P128, n_p), 128)                      # balanced, <= tp_ub
    else:                                                            # explicit override (tests)
        tp = min(max(128, _round_up(int(tp), 128)), P128)
        n_p = pl.cdiv(P128, tp)
    mask_p = (n_p * tp != P)                 # ragged last tile -> in-kernel lane mask

    # ---- Optional C-row split: batch-1 compute-bound layers use both TCs (v7x). ----
    split_c = (N == 1) and (C >= 256) and (C % 16 == 0)
    n_c = 2 if split_c else 1
    tc = C // n_c

    # ---- Pipeline depth & VMEM budget (sized for v7x: 64 MiB phys / 32 MiB scoped). ----
    n_buf_in = 3 if (C <= 128 and n_p >= 3) else 2                   # HBM-bound small-C case
    need = (n_buf_in * C * tp * in_itemsize                          # input tile buffers
            + 2 * tc * C * 4                                         # resident f32 output
            + (2 << 20))                                             # headroom
    vmem_limit = int(min(max(need, 16 << 20), 32 << 20))
    if need > (32 << 20):
        vmem_limit = int(need)

    out = pl.pallas_call(
        functools.partial(_gram_kernel, inv_p=1.0 / float(P), total_p=P,
                          tc=tc, split_c=split_c, mask_p=mask_p),
        out_shape=jax.ShapeDtypeStruct((N, C, C), jnp.float32),
        grid=(N, n_c, n_p),
        in_specs=[_feature_spec((1, C, tp), lambda n, ci, p: (n, 0, p), n_buf_in)],
        out_specs=pl.BlockSpec((1, tc, C), lambda n, ci, p: (n, ci, 0)),
        compiler_params=pltpu.CompilerParams(
            dimension_semantics=("parallel", "parallel", "arbitrary"),
            vmem_limit_bytes=vmem_limit),
    )(f)
    return out.astype(x_nchw.dtype)


class GramMatrixLayer:
    """JAX/Pallas port of the PyTorch GramMatrixLayer (forward semantics preserved)."""

    def forward(self, x):
        return gram_matrix(x)

    __call__ = forward


# ----------------------------- Pure-JAX reference -----------------------------

def _ref_gram(x_nchw):
    N, C, H, W = x_nchw.shape
    f = x_nchw.reshape(N, C, H * W).astype(jnp.float32)
    g = jnp.einsum('ncp,ndp->ncd', f, f, precision=lax.Precision.HIGHEST)
    return g / float(H * W)


# ----------------------------- Main -----------------------------

if __name__ == "__main__":
    key = jax.random.PRNGKey(0)
    layer = GramMatrixLayer()

    # (shape, forced tp) — small shapes that still cover every kernel path.
    cases = [
        ((2, 4, 16, 16), None),   # tiny C, single full-width P tile
        ((2, 64, 12, 12), None),  # P = 144: ragged tile, in-kernel lane mask
        ((1, 32, 48, 48), None),  # P = 2304: one exact tile, no masking
        ((1, 64, 20, 20), 128),   # forced small tp: 4-step accumulation + mask (+Buffered)
        ((1, 256, 8, 8), None),   # C-row split path (batch-1, C >= 256)
    ]
    for shp, tp in cases:
        key, kx = jax.random.split(key)
        x = jax.random.normal(kx, shp, jnp.float32)        # NCHW, as in PyTorch
        out = gram_matrix(x, tp=tp) if tp is not None else layer(x)
        jax.block_until_ready(out)
        ref = _ref_gram(x)
        assert out.shape == ref.shape, (shp, out.shape, ref.shape)
        # bf16 MXU operands with f32 accumulation: matches f32 reference to ~1e-2.
        assert bool(jnp.allclose(out, ref, rtol=2e-2, atol=2e-2)), f"gram mismatch for {shp}"

    print("KERNEL_OK")
</pallas_src>

<mosaic_0001>
module attributes {stable_mosaic.version = 11 : i64} {
  func.func @_gram_kernel(%arg0: i32, %arg1: i32, %arg2: i32, %arg3: memref<1x4x256xf32, #tpu.memory_space<vmem>>, %arg4: memref<1x4x4xf32, #tpu.memory_space<vmem>>) attributes {dimension_semantics = [#tpu.dimension_semantics<parallel>, #tpu.dimension_semantics<parallel>, #tpu.dimension_semantics<arbitrary>], iteration_bounds = array<i64: 2, 1, 1>, scalar_prefetch = 0 : i64, scratch_operands = 0 : i64, tpu.core_type = #tpu.core_type<tc>, window_params = [{transform_indices = @transform_0, window_bounds = array<i64: 1, 4, 256>}, {transform_indices = @transform_1, window_bounds = array<i64: 1, 4, 4>}]} {
    %c0_i32 = arith.constant 0 : i32
    %0 = arith.cmpi eq, %arg2, %c0_i32 : i32
    %1 = arith.extui %0 : i1 to i32
    %c0_i32_0 = arith.constant 0 : i32
    %2 = arith.cmpi ne, %1, %c0_i32_0 : i32
    scf.if %2 {
      %cst_11 = arith.constant 0.000000e+00 : f32
      %16 = vector.broadcast %cst_11 : f32 to vector<1x4x4xf32>
      %c0_12 = arith.constant 0 : index
      %c0_13 = arith.constant 0 : index
      %c0_14 = arith.constant 0 : index
      %17 = vector.load %arg4[%c0_12, %c0_13, %c0_14] : memref<1x4x4xf32, #tpu.memory_space<vmem>>, vector<1x4x4xf32>
      tpu.vector_store %arg4[%c0_12, %c0_13, %c0_14], %16 {strides = array<i32>} : memref<1x4x4xf32, #tpu.memory_space<vmem>>, vector<1x4x4xf32>,
    } else {
    }
    %c0 = arith.constant 0 : index
    %c0_1 = arith.constant 0 : index
    %c0_2 = arith.constant 0 : index
    %3 = vector.load %arg3[%c0, %c0_1, %c0_2] : memref<1x4x256xf32, #tpu.memory_space<vmem>>, vector<1x4x256xf32>
    %4 = vector.shape_cast %3 : vector<1x4x256xf32> to vector<4x256xf32>
    %5 = arith.truncf %4 : vector<4x256xf32> to vector<4x256xbf16>
    %c0_3 = arith.constant 0 : index
    %c0_4 = arith.constant 0 : index
    %c0_5 = arith.constant 0 : index
    %6 = vector.load %arg4[%c0_3, %c0_4, %c0_5] : memref<1x4x4xf32, #tpu.memory_space<vmem>>, vector<1x4x4xf32>
    %7 = vector.shape_cast %6 : vector<1x4x4xf32> to vector<4x4xf32>
    %cst = arith.constant dense<0.000000e+00> : vector<4x4xf32>
    %8 = tpu.matmul %5, %5, %cst {dimension_numbers = #tpu.dot_dimension_numbers<[1], [1], [0], [0], [0, 0, 1, 0], [], []>} : vector<4x256xbf16>, vector<4x256xbf16>, vector<4x4xf32> -> vector<4x4xf32>
    %9 = arith.addf %7, %8 : vector<4x4xf32>
    %c0_6 = arith.constant 0 : index
    %c0_7 = arith.constant 0 : index
    %c0_8 = arith.constant 0 : index
    %10 = vector.load %arg4[%c0_6, %c0_7, %c0_8] : memref<1x4x4xf32, #tpu.memory_space<vmem>>, vector<1x4x4xf32>
    %11 = vector.shape_cast %10 : vector<1x4x4xf32> to vector<4x4xf32>
    %12 = vector.shape_cast %9 : vector<4x4xf32> to vector<1x4x4xf32>
    tpu.vector_store %arg4[%c0_6, %c0_7, %c0_8], %12 {strides = array<i32>} : memref<1x4x4xf32, #tpu.memory_space<vmem>>, vector<1x4x4xf32>,
    %c0_i32_9 = arith.constant 0 : i32
    %13 = arith.cmpi eq, %arg2, %c0_i32_9 : i32
    %14 = arith.extui %13 : i1 to i32
    %c0_i32_10 = arith.constant 0 : i32
    %15 = arith.cmpi ne, %14, %c0_i32_10 : i32
    scf.if %15 {
      %c0_11 = arith.constant 0 : index
      %c0_12 = arith.constant 0 : index
      %c0_13 = arith.constant 0 : index
      %16 = vector.load %arg4[%c0_11, %c0_12, %c0_13] : memref<1x4x4xf32, #tpu.memory_space<vmem>>, vector<1x4x4xf32>
      %cst_14 = arith.constant 3.906250e-03 : f32
      %17 = vector.broadcast %cst_14 : f32 to vector<1x4x4xf32>
      %18 = arith.mulf %16, %17 : vector<1x4x4xf32>
      %c0_15 = arith.constant 0 : index
      %c0_16 = arith.constant 0 : index
      %c0_17 = arith.constant 0 : index
      %19 = vector.load %arg4[%c0_15, %c0_16, %c0_17] : memref<1x4x4xf32, #tpu.memory_space<vmem>>, vector<1x4x4xf32>
      tpu.vector_store %arg4[%c0_15, %c0_16, %c0_17], %18 {strides = array<i32>} : memref<1x4x4xf32, #tpu.memory_space<vmem>>, vector<1x4x4xf32>,
    } else {
    }
    return
  }
  func.func @transform_0(%arg0: i32, %arg1: i32, %arg2: i32) -> (i32, i32, i32) {
    %c0_i32 = arith.constant 0 : i32
    %c0_i32_0 = arith.constant 0 : i32
    return %arg0, %c0_i32, %arg2 : i32, i32, i32
  }
  func.func @transform_1(%arg0: i32, %arg1: i32, %arg2: i32) -> (i32, i32, i32) {
    %c0_i32 = arith.constant 0 : i32
    %c0_i32_0 = arith.constant 0 : i32
    return %arg0, %arg1, %c0_i32 : i32, i32, i32
  }
}

</mosaic_0001>

<bundles_post_ra>
// kernel: tpu_custom_call.1
= control target key start
LH: loop header
LB: loop body
LE: loop exit
PB: predicated region body
PF: predicated region fallthrough
CT: control target
= control target key end

     0   :  { %6 = vsyncpa [#allocation3], 0  ;;  %s704_s0 = inlined_call_operand.hbm [shape: f32[2,4,256], index: 0, kind: input, shape index: {}]   ;;  %s705_s1 = inlined_call_operand.hbm [shape: f32[2,4,4], index: 1, kind: output, shape index: {}]  }
   0x1   :  { %8 = vsyncpa [#allocation3 + $0x1], 0 }
   0x2   :  { %9 = vsyncpa [#allocation4], 0 }
   0x3   :  { %11 = vsyncpa [#allocation4 + $0x1], 0  ;;  %s528_s6 = smov 0   ;;  %s530_s7 = smov 0  }
   0x4   :  { %s532_s8 = smov 0   ;;  %s534_s9 = smov 0  }
   0x5   :  { %s536_s10 = smov 0   ;;  %s538_s11 = smov 0  }
   0x6 LB: > { %s322_s12 = sadd.s32 4294967295, %s513_s11   ;;  %s323_s13 = sadd.s32 4294967294, %s513_s11   ;;  %s513_s11 = sphi %s538_s11, %s17_s11   ;;  %s509_s10 = sphi %s536_s10, %s721_s10   ;;  %s505_s9 = sphi %s534_s9, %s720_s9   ;;  %s501_s8 = sphi %s532_s8, %s719_s8   ;;  %s497_s7 = sphi %s530_s7, %s718_s7   ;;  %s493_s6 = sphi %s528_s6, %s717_s6  }
   0x7   : > { %s36_s14 = sadd.s32 1, %s509_s10  ;;  %s45_s15 = sadd.s32 1, %s501_s8 }
   0x8   : > { %p38_p0 = scmp.ge.s32.totalorder %s36_s14, 2  ;;  %p52_p1 = scmp.ne.s32.totalorder %s501_s8, %s497_s7 }
   0x9   : > { %p53_p2 = scmp.eq.s32.totalorder %s513_s11, 0  ;;  %p58_p3 = scmp.ne.s32.totalorder %s497_s7, %s493_s6 }
   0xa   : > { %s723_s14 = smov (%p38_p0, %s36_s14), 0  ;;  %p59_p5 = scmp.eq.s32.totalorder %s322_s12, 0 }
   0xb   : > { %p569_p4 = por %p53_p2, %p52_p1  ;;  %s40_s17 = ssub.s32 %s509_s10, %s723_s14 }
   0xc   : > { %p84_p6 = scmp.eq.s32.totalorder %s322_s12, 1  ;;  %p43_p7 = scmp.eq.s32.totalorder %s40_s17, 0 }
   0xd   : > { %p575_p8 = por %p59_p5, %p58_p3  ;;  %p90_p10 = scmp.eq.s32.totalorder %s323_s13, 1 }
   0xe   : > { %p579_p9 = por %p84_p6, %p52_p1  ;;  %p349_p13 = scmp.lt.s32.totalorder %s513_s11, 2 }
   0xf   : > { %s584_s20 = scalar_select %p43_p7, %s501_s8, %s45_s15  }
  0x10   : > { %s709_s19 = scalar_select %p579_p9, 1, 0 }
  0x11   : > { %p586_p11 = por %p90_p10, %p58_p3  ;;  %s110_s22 = sand.u32 1, %s501_s8  }
  0x12   : > { %s326_s23 = sshll.u32 %s110_s22, 3  ;;  %s336_s24 = sshll.u32 %s509_s10, 7 }
  0x13   : > { %s710_s21 = scalar_select %p586_p11, 1, 0 }
  0x14   : > { %s597_s27 = scalar_lea.hbm %s704_s0, %s336_s24  ;;  %s114_s28 = scalar_lea.vmem [#allocation2], %s326_s23 }
  0x15   : > { %s124_s29 = sshll.u32 %s114_s28, 4  ;;  %p603_p0 = pnand %p349_p13, %p569_p4  ;;  %s599_s29 = int_to_ptr.vmem [resolvable:$true] %s124_s29 }
  0x16   : > { %s111_s2 = scalar_lea.sflag [#allocation3], %s110_s22  ;;  %s401_s3 = scalar_lea.hbm %s597_s27, 128 }
  0x17   : > { %p402_p3 = scmp.ne.s32.totalorder %s597_s27, %s401_s3  ;;  %p403_p5 = pneg %p603_p0 }
  0x18   : > { %s406_s12 = scalar_lea.hbm %s704_s0, 256  ;;  %p407_p4 = scmp.lt.u32.totalorder %s597_s27, %s704_s0 }
  0x19   : > { %p404_p6 = pnand %p403_p5, %p402_p3  ;;  %p408_p10 = scmp.lt.u32.totalorder %s406_s12, %s401_s3 }
  0x1a   : > { %p410_p12 = scmp.lt.u32.totalorder %s401_s3, %s597_s27 }
  0x1b   : > { %p405_p7 = pneg %p404_p6  ;;  %p409_p13 = por %p408_p10, %p407_p4 }
  0x1d   : > { %p411_p1 = por %p410_p12, %p409_p13 }
  0x1f   : > { %p412_p2 = pnand %p411_p1, %p405_p7 }
  0x21   : > { %415 = shalt.err (!%p412_p2)
}
  0x22   : > { %s416_s16 = scalar_lea.vmem %s599_s29, 128  ;;  %s515_s17 = smov [#allocation2]  }
  0x23   : > { %p417_p3 = scmp.ne.s32.totalorder %s599_s29, %s416_s16  ;;  %s421_s22 = sshll.u32 %s515_s17, 4  ;;  %s422_s22 = int_to_ptr.vmem [resolvable:$false] %s421_s22 }
  0x24   : > { %s423_s23 = scalar_lea.vmem %s422_s22, 256  ;;  %p424_p9 = scmp.lt.s32.totalorder %s599_s29, %s422_s22 }
  0x25   : > { %p419_p6 = pnand %p417_p3, %p403_p5  ;;  %p425_p4 = scmp.lt.s32.totalorder %s423_s23, %s416_s16 }
  0x27   : > { %p420_p11 = pneg %p419_p6  ;;  %p426_p10 = por %p425_p4, %p424_p9 }
  0x29   : > { %p427_p12 = pnand %p426_p10, %p420_p11 }
  0x2b   : > { %430 = shalt.err (!%p427_p12)
}
  0x2c   : > { %344 = dma.hbm_to_vmem [thread:$0]  (!%p603_p0), %s597_s27, 128, %s599_s29, %s111_s2  }
  0x2d   : > { %p712_p1 = scmp.lt.s32.totalorder %s513_s11, 3  ;;  %p713_p2 = scmp.ge.s32.totalorder %s513_s11, 1 }
  0x2f   : > { %p130_p5 = pnand %p713_p2, %p712_p1 }
  0x30   : > { %s639_s24 = sand.u32 (!%p130_p5), 1, %s497_s7  }
  0x31   : > { %133 = sbr.rel (%p130_p5) target bundleno = 308 (0x134), region = 24  ;;  %s330_s25 = sshll.u32 (!%p130_p5), %s639_s24, 3 }
  0x32   : > { %s136_s26 = scalar_lea.sflag (!%p130_p5), [#allocation3], %s639_s24  ;;  %s139_s28 = scalar_lea.vmem (!%p130_p5), [#allocation2], %s330_s25 }
  0x38   : > { %484 = dma.done.wait (%p575_p8), %s136_s26, 128  }
  0x39   : > { %486 = vsyncadd (%p575_p8), %s136_s26, 4294967168  ;;  %s331_s27 = sshll.u32 %s639_s24, 2  ;;  %vm164_vm0 = vcmask 27648   ;;  %v516_v0 = vmov 0.0   ;;  %v166_v1 = vld [vmem:[%s139_s28] sm:$0xff]  ;;  %s333_s18 = sshll.u32 %s505_s9, 6 }
  0x3a   : > { %s157_s29 = scalar_lea.vmem [#allocation5], %s331_s27  ;;  %v168_v2 = vcombine.high %v166_v1, %v166_v1  ;;  %v170_v3 = vpack.c.bf16 %v166_v1, %v166_v1  ;;  %s654_s4 = scalar_lea.hbm %s705_s1, %s333_s18 }
  0x3b   : > { %165 = vst.msk [vmem:[%s157_s29] sm:$0xf] %vm164_vm0, %v516_v0  ;;  %s237_s30 = sshll.u32 %s157_s29, 4  ;;  %s223_s5 = scalar_lea.sflag [#allocation4], %s639_s24  ;;  %s656_s30 = int_to_ptr.vmem [resolvable:$true] %s237_s30 }
  0x3c   : > { %v171_v4 = vpack.c.bf16 %v168_v2, %v168_v2  ;;  %s431_s12 = scalar_lea.vmem %s656_s30, 64  ;;  %p714_p9 = scmp.ne.s32.totalorder %s709_s19, 0 }
  0x3d   : > { %p432_p8 = scmp.ne.s32.totalorder %s656_s30, %s431_s12  ;;  %s517_s9 = smov [#allocation5]  }
  0x3e   : > { %173 = vmatprep.subr.bf16.mxu0 %v171_v4  ;;  %205 = vmatprep.mubr.bf16.mxu0 %v171_v4  ;;  %s435_s13 = sshll.u32 %s517_s9, 4  ;;  %s436_s13 = int_to_ptr.vmem [resolvable:$false] %s435_s13 }
  0x3f   : > { %174 = vmatpush1.bf16.xpose.msra.mxu0 %v170_v3  ;;  %p433_p11 = pnand %p432_p8, %p714_p9  ;;  %s437_s15 = scalar_lea.vmem %s436_s13, 128 }
  0x40   : > { %p438_p7 = scmp.lt.s32.totalorder %s656_s30, %s436_s13  ;;  %p439_p13 = scmp.lt.s32.totalorder %s437_s15, %s431_s12 }
  0x41   : > { %p434_p0 = pneg %p433_p11 }
  0x42   : > { %v172_v5 = vld [vmem:[%s157_s29] sm:$0xf]  ;;  %p440_p3 = por %p439_p13, %p438_p7 }
  0x44   : > { %p441_p6 = pnand %p440_p3, %p434_p0 }
  0x46   : > { %206 = vmatmul.mubr.bf16.vlgmr.msra.gmra.mrb[0].mxu0 %v170_v3 }
 0x119   : > { %v207_v6 = vpop.f32.mrb[0].mxu0 }
 0x11a   : > { %v213_v7 = vadd.f32 %v207_v6, %v172_v5  ;;  %v209_v8 = vpop.f32.mrb[1].mxu0 }
 0x11b   : > { %v210_v9 = vpop.f32.mrb[2].mxu0 }
 0x11c   : > { %215 = vst.msk [vmem:[%s157_s29] sm:$0xf] %vm164_vm0, %v213_v7  ;;  %v211_v10 = vpop.f32.mrb[3].mxu0 }
 0x123   : > { %v219_v11 = vld [vmem:[%s157_s29] sm:$0xf] }
 0x124   : > { %v220_v12 = vmul.f32 0.00390625, %v219_v11 }
 0x126   : > { %221 = vst.msk [vmem:[%s157_s29] sm:$0xf] %vm164_vm0, %v220_v12 }
 0x127   : > { %444 = shalt.err (!%p441_p6)
}
 0x128   : > { %s445_s16 = scalar_lea.hbm %s654_s4, 64  ;;  %s449_s23 = scalar_lea.hbm %s705_s1, 128 }
 0x129   : > { %p446_p4 = scmp.ne.s32.totalorder %s654_s4, %s445_s16  ;;  %p450_p1 = scmp.lt.u32.totalorder %s654_s4, %s705_s1 }
 0x12a   : > { %p451_p2 = scmp.lt.u32.totalorder %s449_s23, %s445_s16  ;;  %p453_p8 = scmp.lt.u32.totalorder %s445_s16, %s654_s4 }
 0x12b   : > { %p447_p10 = pnand %p446_p4, %p714_p9 }
 0x12c   : > { %p452_p5 = por %p451_p2, %p450_p1 }
 0x12d   : > { %p448_p12 = pneg %p447_p10 }
 0x12e   : > { %p454_p11 = por %p453_p8, %p452_p5 }
 0x130   : > { %p455_p0 = pnand %p454_p11, %p448_p12 }
 0x132   : > { %458 = shalt.err (!%p455_p0)
}
 0x133   : > { %339 = dma.vmem_to_hbm [thread:$0]  (%p714_p9), %s656_s30, 64, %s654_s4, %s223_s5  }
 0x134 PF: > { %s249_s26 = sand.u32 1, %s493_s6   ;;  %p715_p7 = scmp.ne.s32.totalorder %s710_s21, 0 }
 0x135   : > { %p716_p13 = scmp.ge.s32.totalorder %s513_s11, 2  ;;  %s250_s28 = scalar_lea.sflag [#allocation4], %s249_s26 }
 0x137   : > { %p346_p3 = pnand %p716_p13, %p715_p7 }
 0x139   : > { %488 = dma.done.wait (!%p346_p3), %s250_s28, 64  }
 0x13a   : > { %490 = vsyncadd (!%p346_p3), %s250_s28, 4294967232  ;;  %s17_s11 = sadd.s32 1, %s513_s11   ;;  %s717_s6 = smov %s497_s7 }
 0x13b   : > { %p14_p6 = scmp.ge.s32.totalorder %s17_s11, 4   ;;  %s718_s7 = smov %s501_s8 }
 0x13c   : > { %s719_s8 = smov %s584_s20  ;;  %s720_s9 = smov %s509_s10 }
 0x13d   : > { %s721_s10 = smov %s723_s14  ;;  %16 = sbr.rel (!%p14_p6) target bundleno = 6 (0x6), region = 77 }
 0x144   :  { %255 = vsyncpa [#allocation3], 1 }
 0x145   :  { %257 = vsyncpa [#allocation3 + $0x1], 1 }
 0x146   :  { %258 = vsyncpa [#allocation4], 1 }
 0x147   :  { %260 = vsyncpa [#allocation4 + $0x1], 1 }

</bundles_post_ra>
